<compile_context>
chip_gen: v7x
topology: tpu7x:2x2x1
jax: 0.10.0
libtpu: 0.0.40
codegen_flags: <defaults>
</compile_context>

<pallas_src>
import jax
import jax.numpy as jnp
from jax import lax
from jax.experimental import pallas as pl
from jax.experimental.pallas import tpu as pltpu


def _round_up(x, m):
    return (x + m - 1) // m * m


# ---------------------------------------------------------------------------
# Path 1: manual DMA row gather (general path, any vocab size).
# ---------------------------------------------------------------------------
def _make_dma_gather_kernel(rows_per_block: int, inflight: int):
    R, K = rows_per_block, inflight
    assert K & (K - 1) == 0, "inflight DMA count must be a power of two"

    def kernel(idx_ref, w_hbm, o_ref, sem):
        # idx_ref : SMEM scalar-prefetch ref, flattened (padded) indices.
        # w_hbm   : full (V, D_pad) embedding table left in HBM (pl.ANY).
        # o_ref   : (R, D_pad) output tile in VMEM -- DMA destination.
        # sem     : (K,) DMA semaphores, K row copies kept in flight.
        base = pl.program_id(0) * R

        def issue(r, slot):
            row = idx_ref[base + r]
            pltpu.make_async_copy(w_hbm.at[row], o_ref.at[r], sem.at[slot]).start()

        def wait_row(r, slot):
            # Wait descriptor only needs a matching size + the right semaphore.
            pltpu.make_async_copy(w_hbm.at[0], o_ref.at[r], sem.at[slot]).wait()

        k_live = min(K, R)

        # Prologue: prime k_live row DMAs (static unroll, distinct slots).
        for r in range(k_live):
            issue(r, r)

        # Steady state: wait for DMA r-K, then reuse its slot for DMA r.
        if R > K:
            def body(r, carry):
                slot = r & (K - 1)
                wait_row(r - K, slot)
                issue(r, slot)
                return carry

            lax.fori_loop(K, R, body, 0)

        # Epilogue: drain the last k_live outstanding DMAs.
        for r in range(R - k_live, R):
            wait_row(r, r % K)

    return kernel


def _dma_gather_lookup(flat_idx, weight_p, num_chunks, R, D_pad, *, inflight=8):
    rows_pad = num_chunks * R
    itemsize = jnp.dtype(weight_p.dtype).itemsize
    return pl.pallas_call(
        _make_dma_gather_kernel(R, inflight),
        out_shape=jax.ShapeDtypeStruct((rows_pad, D_pad), weight_p.dtype),
        grid_spec=pltpu.PrefetchScalarGridSpec(
            num_scalar_prefetch=1,
            grid=(num_chunks,),
            in_specs=[pl.BlockSpec(memory_space=pl.ANY)],   # table stays in HBM
            out_specs=pl.BlockSpec((R, D_pad), lambda i, idx: (i, 0)),
            scratch_shapes=[pltpu.SemaphoreType.DMA((inflight,))],
        ),
        compiler_params=pltpu.CompilerParams(dimension_semantics=("parallel",)),
        cost_estimate=pl.CostEstimate(
            flops=0,
            transcendentals=0,
            bytes_accessed=2 * rows_pad * D_pad * itemsize + rows_pad * 4,
        ),
    )(flat_idx, weight_p)


# ---------------------------------------------------------------------------
# Path 2: small tables resident in VMEM, one-hot MXU gather.
# ---------------------------------------------------------------------------
def _make_resident_kernel(vocab: int):
    V = vocab

    def kernel(idx_ref, w_ref, o_ref):
        # idx_ref : (1, R, 1) int32 indices for this block (VMEM).
        # w_ref   : (V, D_pad) table resident in VMEM (constant index_map).
        # o_ref   : (R, D_pad) output tile.
        idx = idx_ref[0]                                    # (R, 1)
        R = idx.shape[0]
        iota = lax.broadcasted_iota(jnp.int32, (R, V), 1)
        onehot = jnp.where(iota == idx,
                           jnp.ones((), w_ref.dtype),
                           jnp.zeros((), w_ref.dtype))      # (R, V), exact 0/1
        acc = jnp.dot(onehot, w_ref[...], preferred_element_type=jnp.float32)
        o_ref[...] = acc.astype(o_ref.dtype)

    return kernel


def _resident_lookup(flat_idx, weight_p, num_chunks, R, D_pad):
    rows_pad = num_chunks * R
    V = weight_p.shape[0]
    itemsize = jnp.dtype(weight_p.dtype).itemsize
    idx_blocks = flat_idx.reshape(num_chunks, R, 1)
    return pl.pallas_call(
        _make_resident_kernel(V),
        out_shape=jax.ShapeDtypeStruct((rows_pad, D_pad), weight_p.dtype),
        grid_spec=pltpu.PrefetchScalarGridSpec(
            num_scalar_prefetch=0,
            grid=(num_chunks,),
            in_specs=[
                pl.BlockSpec((1, R, 1), lambda i: (i, 0, 0)),    # index chunk
                pl.BlockSpec((V, D_pad), lambda i: (0, 0)),      # resident table
            ],
            out_specs=pl.BlockSpec((R, D_pad), lambda i: (i, 0)),
        ),
        compiler_params=pltpu.CompilerParams(dimension_semantics=("parallel",)),
        cost_estimate=pl.CostEstimate(
            flops=2 * rows_pad * V * D_pad,
            transcendentals=0,
            bytes_accessed=(V * D_pad + 2 * rows_pad * D_pad) * itemsize
            + rows_pad * 4,
        ),
    )(idx_blocks, weight_p)


# ---------------------------------------------------------------------------
# Public forward.
# ---------------------------------------------------------------------------
def embedding_forward(indices, weight, *, rows_per_block=256, force_path=None):
    """out[i, j] = weight[indices[i, j]]  (torch.nn.Embedding forward).

    indices: int array [m, n]; weight: [num_embeddings, embedding_dim].
    Returns [m, n, embedding_dim] in weight's dtype.
    """
    m, n = indices.shape
    V, D = weight.shape
    itemsize = jnp.dtype(weight.dtype).itemsize
    num_rows = m * n

    # Lane-pad the embedding dim to a multiple of 128 so all stores/DMAs are
    # lane-dense; sliced back off at the end.
    D_pad = _round_up(D, 128)
    weight_p = weight if D_pad == D else jnp.pad(weight, ((0, 0), (0, D_pad - D)))

    # Torch raises on out-of-range indices; a bad index here would become a bad
    # DMA source offset, so clamp (cheap, outside the kernel).
    flat_idx = jnp.clip(indices.reshape(-1).astype(jnp.int32), 0, V - 1)

    # Rows per grid step: sublane-dense for the weight dtype, big enough to
    # amortize the fixed per-step pipeline overhead, but capped so one output
    # tile stays <= ~2 MiB (double-buffered tiles then fit every chip's default
    # scoped-VMEM limit, including v5e's 16 MiB).
    sublane = max(8, 32 // itemsize)           # 8 for f32, 16 for bf16
    row_bytes = D_pad * itemsize
    budget_rows = max(sublane, ((2 << 20) // row_bytes) // sublane * sublane)
    R = min(_round_up(rows_per_block, sublane),
            budget_rows,
            _round_up(num_rows, sublane))
    R = max(R, sublane)
    rows_pad = _round_up(num_rows, R)
    if rows_pad != num_rows:
        flat_idx = jnp.pad(flat_idx, (0, rows_pad - num_rows))  # pad with row 0
    num_chunks = rows_pad // R

    # Small tables -> keep resident in VMEM (one HBM crossing total);
    # large tables -> manual row gather with several DMAs in flight.
    table_bytes = V * D_pad * itemsize
    use_resident = table_bytes <= (2 << 20) and V <= 1024
    if force_path == "dma":
        use_resident = False
    elif force_path == "resident":
        use_resident = True

    if use_resident:
        out_flat = _resident_lookup(flat_idx, weight_p, num_chunks, R, D_pad)
    else:
        # TODO(synk): for very long sequences (>~100K tokens) chunk the index
        # prefetch (per-block SMEM blocks) instead of scalar-prefetching the
        # whole flat index array.
        out_flat = _dma_gather_lookup(flat_idx, weight_p, num_chunks, R, D_pad)

    return out_flat[:num_rows, :D].reshape(m, n, D)


def make_embedding_weight(key, num_embeddings, embedding_dim, padding_idx=None):
    """Matches torch reset_parameters(): weight ~ N(0, 1); weight[padding_idx] = 0."""
    w = jax.random.normal(key, (num_embeddings, embedding_dim), dtype=jnp.float32)
    if padding_idx is not None:
        w = w.at[padding_idx].set(0.0)
    return w


# TODO(synk): max_norm / norm_type renormalization (in-place weight-table
# mutation in the PyTorch backend) is not implemented; default max_norm=None
# path only. scale_grad_by_freq affects only the backward pass (out of scope).


if __name__ == "__main__":
    key = jax.random.PRNGKey(0)
    wkey, ikey, ikey2, wkey2, ikey3 = jax.random.split(key, 5)

    # Case A: 128-dim table with padding_idx=0 (torch docstring-style example).
    num_embeddings, embedding_dim, padding_idx = 16, 128, 0
    weight = make_embedding_weight(wkey, num_embeddings, embedding_dim, padding_idx)

    # a batch of 2 samples of 4 indices each, with one padding_idx hit
    indices = jax.random.randint(ikey, (2, 4), 0, num_embeddings, dtype=jnp.int32)
    indices = indices.at[0, 0].set(padding_idx)
    ref = jnp.take(weight, indices, axis=0)

    # larger case: multi-block grid + row padding
    indices2 = jax.random.randint(ikey2, (3, 100), 0, num_embeddings, dtype=jnp.int32)
    ref2 = jnp.take(weight, indices2, axis=0)

    # Case B: embedding_dim not a multiple of 128 (exercises lane padding).
    weight3 = make_embedding_weight(wkey2, 10, 80, None)
    indices3 = jax.random.randint(ikey3, (2, 8), 0, 10, dtype=jnp.int32)
    ref3 = jnp.take(weight3, indices3, axis=0)

    for force in ("resident", "dma"):
        out = jax.block_until_ready(
            embedding_forward(indices, weight, force_path=force))
        assert out.shape == (2, 4, embedding_dim)
        assert jnp.allclose(out, ref), f"mismatch ({force}) on small case"
        assert jnp.all(out[0, 0] == 0.0), f"padding_idx row not zero ({force})"

        out2 = jax.block_until_ready(
            embedding_forward(indices2, weight, force_path=force))
        assert out2.shape == (3, 100, embedding_dim)
        assert jnp.allclose(out2, ref2), f"mismatch ({force}) on multi-block case"

        out3 = jax.block_until_ready(
            embedding_forward(indices3, weight3, force_path=force))
        assert out3.shape == (2, 8, 80)
        assert jnp.allclose(out3, ref3), f"mismatch ({force}) on lane-padded case"

    print("KERNEL_OK")
</pallas_src>

<mosaic_0001>
module attributes {stable_mosaic.version = 11 : i64} {
  func.func @kernel(%arg0: i32, %arg1: memref<1x8x1xi32, #tpu.memory_space<vmem>>, %arg2: memref<16x128xf32, #tpu.memory_space<vmem>>, %arg3: memref<8x128xf32, #tpu.memory_space<vmem>>) attributes {dimension_semantics = [#tpu.dimension_semantics<parallel>], iteration_bounds = array<i64: 1>, scalar_prefetch = 0 : i64, scratch_operands = 0 : i64, tpu.core_type = #tpu.core_type<tc>, window_params = [{transform_indices = @transform_0, window_bounds = array<i64: 1, 8, 1>}, {pipeline_mode = #tpu.pipeline_mode<synchronous>, transform_indices = @transform_1, window_bounds = array<i64: 16, 128>}, {transform_indices = @transform_2, window_bounds = array<i64: 8, 128>}]} {
    %c0 = arith.constant 0 : index
    %c0_0 = arith.constant 0 : index
    %c0_1 = arith.constant 0 : index
    %0 = vector.load %arg1[%c0, %c0_0, %c0_1] : memref<1x8x1xi32, #tpu.memory_space<vmem>>, vector<1x8x1xi32>
    %1 = vector.shape_cast %0 : vector<1x8x1xi32> to vector<8x1xi32>
    %2 = tpu.iota {dimensions = array<i32: 1>} : vector<8x16xi32>
    %3 = vector.broadcast %1 : vector<8x1xi32> to vector<8x16xi32>
    %4 = arith.cmpi eq, %2, %3 : vector<8x16xi32>
    %cst = arith.constant 1.000000e+00 : f32
    %cst_2 = arith.constant 0.000000e+00 : f32
    %5 = vector.broadcast %cst : f32 to vector<8x16xf32>
    %6 = vector.broadcast %cst_2 : f32 to vector<8x16xf32>
    %7 = arith.select %4, %5, %6 : vector<8x16xi1>, vector<8x16xf32>
    %c0_3 = arith.constant 0 : index
    %c0_4 = arith.constant 0 : index
    %8 = vector.load %arg2[%c0_3, %c0_4] : memref<16x128xf32, #tpu.memory_space<vmem>>, vector<16x128xf32>
    %cst_5 = arith.constant dense<0.000000e+00> : vector<8x128xf32>
    %9 = tpu.matmul %7, %8, %cst_5 {dimension_numbers = #tpu.dot_dimension_numbers<[1], [0], [0], [1], [0, 0, 1, 1], [], []>} : vector<8x16xf32>, vector<16x128xf32>, vector<8x128xf32> -> vector<8x128xf32>
    %c0_6 = arith.constant 0 : index
    %c0_7 = arith.constant 0 : index
    %10 = vector.load %arg3[%c0_6, %c0_7] : memref<8x128xf32, #tpu.memory_space<vmem>>, vector<8x128xf32>
    tpu.vector_store %arg3[%c0_6, %c0_7], %9 {strides = array<i32>} : memref<8x128xf32, #tpu.memory_space<vmem>>, vector<8x128xf32>,
    return
  }
  func.func @transform_0(%arg0: i32) -> (i32, i32, i32) {
    %c0_i32 = arith.constant 0 : i32
    %c0_i32_0 = arith.constant 0 : i32
    %c0_i32_1 = arith.constant 0 : i32
    return %arg0, %c0_i32, %c0_i32_0 : i32, i32, i32
  }
  func.func @transform_1(%arg0: i32) -> (i32, i32) {
    %c0_i32 = arith.constant 0 : i32
    %c0_i32_0 = arith.constant 0 : i32
    %c0_i32_1 = arith.constant 0 : i32
    return %c0_i32, %c0_i32_0 : i32, i32
  }
  func.func @transform_2(%arg0: i32) -> (i32, i32) {
    %c0_i32 = arith.constant 0 : i32
    %c0_i32_0 = arith.constant 0 : i32
    return %arg0, %c0_i32 : i32, i32
  }
}

</mosaic_0001>

<bundles_post_ra>
// kernel: tpu_custom_call.1
= control target key start
LH: loop header
LB: loop body
LE: loop exit
PB: predicated region body
PF: predicated region fallthrough
CT: control target
= control target key end

     0   :  { %7 = vsyncpa [#allocation3], 0  ;;  %s247_s0 = inlined_call_operand.vmem [shape: s32[1,8,1], index: 0, kind: input, shape index: {}]   ;;  %s248_s1 = inlined_call_operand.hbm [shape: f32[16,128], index: 1, kind: input, shape index: {}]   ;;  %s249_s2 = inlined_call_operand.hbm [shape: f32[8,128], index: 2, kind: output, shape index: {}]  }
   0x1   :  { %8 = vsyncpa [#allocation4], 0  ;;  %s197_s9 = smov [#allocation2]   ;;  %s149_s13 = scalar_lea.hbm %s248_s1, 256 }
   0x2   :  { %s16_s10 = sshll.u32 %s197_s9, 4  ;;  %p150_p0 = scmp.ne.s32.totalorder %s248_s1, %s149_s13  ;;  %s17_s10 = int_to_ptr.vmem [resolvable:$true] %s16_s10 }
   0x3   :  { %p153_p1 = scmp.lt.u32.totalorder %s149_s13, %s248_s1 }
   0x5   :  { %p155_p2 = pnand %p153_p1, %p150_p0 }
   0x7   :  { %158 = shalt.err (!%p155_p2)
}
   0x8   :  { %s159_s18 = scalar_lea.vmem %s17_s10, 256  ;;  %p164_p4 = scmp.lt.s32.totalorder %s17_s10, %s17_s10 }
   0x9   :  { %p160_p3 = scmp.ne.s32.totalorder %s17_s10, %s159_s18  ;;  %p165_p5 = scmp.lt.s32.totalorder %s159_s18, %s159_s18 }
   0xb   :  { %p166_p6 = por %p165_p5, %p164_p4 }
   0xd   :  { %p167_p7 = pnand %p166_p6, %p160_p3 }
   0xf   :  { %170 = shalt.err (!%p167_p7)
}
  0x10   :  { %s198_s19 = smov 128   ;;  %s199_s20 = smov 8  }
  0x11   :  { %22 = dma.hbm_to_vmem [thread:$0]  %s248_s1, 256, %s17_s10, [#allocation3], %s198_s19, %s198_s19, %s199_s20  }
  0x12   :  { %193 = dma.done.wait [#allocation3], 256  }
  0x13   :  { %194 = vsyncadd [#allocation3], 4294967040  ;;  %v200_v0 = vmov 0   ;;  %v201_v1 = vmov 0.0|0.0   ;;  %v26_v2 = vld [vmem:[%s247_s0] sm:$0xff]  ;;  %v35_v4 = vld [vmem:[#allocation2 + $0x8] sm:$0xff]  ;;  %v27_v7 = vlaneseq }
  0x14   :  { %148 = vset.pattern.permute.xlu0 %v200_v0  ;;  %137 = vmatprep.subr.bf16.mxu0 %v201_v1  ;;  %v34_v3 = vld [vmem:[#allocation2] sm:$0xff]  ;;  %vm202_vm0 = vmmov 0   ;;  %v203_v6 = vmov 0.0   ;;  %vm36_vm1 = vcmask 130048   ;;  %s204_s1 = smov [#allocation5]  }
  0x15   :  { %30 = vperm.xlu0 %148, %v26_v2   ;;  %v138_v5 = vpack.c.bf16 %v35_v4, %v34_v3  ;;  %134 = vmatprep.mubr.msk.f32.mxu0 %vm202_vm0, %v203_v6  ;;  %v28_v8 = vand.u32 127, %v27_v7  ;;  %s117_s25 = sshll.u32 %s204_s1, 4  ;;  %s118_s25 = int_to_ptr.vmem [resolvable:$true] %s117_s25 }
  0x16   :  { %s171_s0 = scalar_lea.vmem %s118_s25, 128  ;;  %p176_p9 = scmp.lt.s32.totalorder %s118_s25, %s118_s25 }
  0x17   :  { %139 = vmatpush3.bf16.msra.mxu0 %v138_v5  ;;  %p172_p8 = scmp.ne.s32.totalorder %s118_s25, %s171_s0  ;;  %p177_p10 = scmp.lt.s32.totalorder %s171_s0, %s171_s0 }
  0x19   :  { %p178_p11 = por %p177_p10, %p176_p9 }
  0x1b   :  { %p179_p12 = pnand %p178_p11, %p172_p8 }
  0x94   :  { %v31_v9 = vpop.permute.xlu0 %30 }
  0x95   :  { %vm32_vm2 = vcmp.eq.s32.totalorder %v28_v8, %v31_v9 }
  0x96   :  { %v33_v10 = vsel %vm32_vm2, 1.0, %v203_v6 }
  0x97   :  { %135 = vmatmul.mubr.msk.f32.vlgmr.msra.gmra.mrb[0].mxu0 %vm36_vm1, %v33_v10 }
 0x16a   :  { %v106_v11 = vpop.f32.mrb[0].mxu0 }
 0x16b   :  { %110 = vst [vmem:[#allocation5] sm:$0xff] %v106_v11  ;;  %v136_v12 = vpop.f32.mrb[1].mxu0 }
 0x16c   :  { %182 = shalt.err (!%p179_p12)
}
 0x16d   :  { %s183_s28 = scalar_lea.hbm %s249_s2, 128 }
 0x16e   :  { %p184_p13 = scmp.ne.s32.totalorder %s249_s2, %s183_s28  ;;  %p187_p0 = scmp.lt.u32.totalorder %s183_s28, %s249_s2 }
 0x170   :  { %p189_p1 = pnand %p187_p0, %p184_p13 }
 0x172   :  { %192 = shalt.err (!%p189_p1)
}
 0x173   :  { %120 = dma.vmem_to_hbm [thread:$0]  %s118_s25, 128, %s249_s2, [#allocation4]  }
 0x174   :  { %195 = dma.done.wait [#allocation4], 128  }
 0x175   :  { %196 = vsyncadd [#allocation4], 4294967168 }
 0x176   :  { %124 = vsyncpa [#allocation3], 1 }
 0x177   :  { %125 = vsyncpa [#allocation4], 1 }

</bundles_post_ra>
